<compile_context>
chip_gen: v7x
topology: tpu7x:2x2x1
jax: 0.10.0
libtpu: 0.0.40
codegen_flags: <defaults>
</compile_context>

<pallas_src>
import math
import jax
import jax.numpy as jnp
from jax import lax
from jax.experimental import pallas as pl
from jax.experimental.pallas import tpu as pltpu


def _make_channel_attention_kernel(has_adj):
    """Build the kernel body; `has_adj` selects whether an adj mask ref exists."""

    def kernel(*refs):
        if has_adj:
            x_ref, adj_ref, wqkv_ref, bqkv_ref, wo_ref, bo_ref, o_ref = refs
        else:
            x_ref, wqkv_ref, bqkv_ref, wo_ref, bo_ref, o_ref = refs
            adj_ref = None

        Bt, N, F_dim = x_ref.shape
        # MXU operand dtype follows the weights (f32 default, bf16 if requested).
        cd = wqkv_ref.dtype

        # Fold (Bt, N, F) -> (Bt*N, F) so the projections are big-M matmuls.
        # Lane dim (F) is unchanged, so this reshape is layout-preserving.
        x2d = x_ref[...].reshape(Bt * N, F_dim).astype(cd)

        # qkv projection as three clean (Bt*N, F) @ (F, F) matmuls + bias + ReLU.
        # (avoids lane-offset slices of a (., 3F) result)
        def proj(i):
            y = jnp.dot(x2d, wqkv_ref[i], preferred_element_type=jnp.float32)
            return jnp.maximum(y + bqkv_ref[i], 0.0)          # f32 elementwise

        q3 = proj(0).reshape(Bt, N, F_dim)                    # (Bt, N, F) f32
        k3 = proj(1).reshape(Bt, N, F_dim)
        v3 = proj(2).reshape(Bt, N, F_dim)

        # ScaledDotProductChannelAttention:
        #   scores[b] = q[b]^T @ k[b] / sqrt(F)   -> (Bt, F, F)
        # Batched dot_general contracts over N without materializing q.T.
        inv_sqrt_dk = 1.0 / math.sqrt(F_dim)
        scores = lax.dot_general(
            q3.astype(cd), k3.astype(cd),
            dimension_numbers=(((1,), (1,)), ((0,), (0,))),
            preferred_element_type=jnp.float32) * inv_sqrt_dk

        # Stable softmax over the last axis (f32), EUP approx reciprocal.
        scores = scores - jnp.max(scores, axis=-1, keepdims=True)
        p = jnp.exp(scores)
        attn = p * pl.reciprocal(jnp.sum(p, axis=-1, keepdims=True), approx=True)

        if has_adj:
            attn = attn * adj_ref[...]            # elementwise channel mask (f32)

        # y[b] = v[b] @ attn[b] : (Bt, N, F) x (Bt, F, F) -> (Bt, N, F)
        y3 = lax.dot_general(
            v3.astype(cd), attn.astype(cd),
            dimension_numbers=(((2,), (1,)), ((0,), (0,))),
            preferred_element_type=jnp.float32)

        # Output projection, folded back to a (Bt*N, F) matmul.
        y2d = y3.reshape(Bt * N, F_dim).astype(cd)
        out2d = jnp.dot(y2d, wo_ref[...], preferred_element_type=jnp.float32)
        out2d = out2d + bo_ref[...]

        o_ref[...] = out2d.reshape(Bt, N, F_dim).astype(o_ref.dtype)

    return kernel


def _choose_block_b(B, N, F_dim, has_adj=False):
    """Pick how many batches to process per grid step.

    Conservative f32 working-set estimate per batch (x, q, k, v, y, out 2x +
    slack -> ~8*N*F floats; scores/p/attn/max/sum (+adj) -> ~5*F*F floats)
    against a budget that fits comfortably inside v7x's smaller scoped VMEM
    while still amortizing per-step overhead on v5e/v6e.
    """
    per_batch_bytes = (8 * N * F_dim + (5 if has_adj else 4) * F_dim * F_dim) * 4
    budget_bytes = 6 * 1024 * 1024
    bt = max(1, min(B, budget_bytes // per_batch_bytes))
    if B >= 2:
        # Keep >= 2 grid steps so both v7x TensorCores get work.
        bt = min(bt, max(1, B // 2))
    # Largest divisor of B not exceeding bt (no ragged last block).
    while B % bt != 0:
        bt -= 1
    return bt


def channel_attention(x, w_qkv, b_qkv, w_o, b_o, adj=None, *,
                      use_bf16_matmul=False, block_b=None):
    """x: (B, N, F). Weights in PyTorch Linear convention: w_qkv (3F, F), w_o (F, F).

    adj: optional channel mask, shape (F, F) or (B, F, F) (torch broadcasting),
    applied as `attention * adj` after the softmax.

    use_bf16_matmul: cast MXU operands to bf16 (f32 accumulation, f32
    elementwise math) -- recommended on v6e/v7x, leave False on v5e.
    """
    B, N, F_dim = x.shape
    w_dtype = jnp.bfloat16 if use_bf16_matmul else jnp.float32

    # (3F, F) torch (out, in) layout -> (3, F_in, F_out) per-chunk weights.
    w_qkv3 = (jnp.asarray(w_qkv, jnp.float32)
              .reshape(3, F_dim, F_dim).transpose(0, 2, 1).astype(w_dtype))
    b_qkv3 = jnp.asarray(b_qkv, jnp.float32).reshape(3, 1, F_dim)       # f32 bias
    w_o_t = jnp.asarray(w_o, jnp.float32).T.astype(w_dtype)             # (F_in, F_out)
    b_o2 = jnp.asarray(b_o, jnp.float32).reshape(1, F_dim)              # f32 bias

    has_adj = adj is not None
    Bt = block_b if block_b is not None else _choose_block_b(B, N, F_dim, has_adj)
    assert B % Bt == 0, (B, Bt)
    grid = (B // Bt,)

    in_specs = [pl.BlockSpec((Bt, N, F_dim), lambda b: (b, 0, 0))]       # x
    args = [x]
    if has_adj:
        adj_b = jnp.broadcast_to(jnp.asarray(adj, jnp.float32), (B, F_dim, F_dim))
        in_specs.append(pl.BlockSpec((Bt, F_dim, F_dim), lambda b: (b, 0, 0)))
        args.append(adj_b)
    in_specs += [
        pl.BlockSpec((3, F_dim, F_dim), lambda b: (0, 0, 0)),            # Wqkv (3,Fin,Fout)
        pl.BlockSpec((3, 1, F_dim), lambda b: (0, 0, 0)),                # bqkv
        pl.BlockSpec((F_dim, F_dim), lambda b: (0, 0)),                  # Wo^T
        pl.BlockSpec((1, F_dim), lambda b: (0, 0)),                      # bo
    ]
    args += [w_qkv3, b_qkv3, w_o_t, b_o2]

    return pl.pallas_call(
        _make_channel_attention_kernel(has_adj),
        out_shape=jax.ShapeDtypeStruct((B, N, F_dim), x.dtype),
        grid_spec=pltpu.PrefetchScalarGridSpec(
            num_scalar_prefetch=0,
            grid=grid,
            in_specs=in_specs,
            out_specs=pl.BlockSpec((Bt, N, F_dim), lambda b: (b, 0, 0)),
        ),
        compiler_params=pltpu.CompilerParams(
            dimension_semantics=("parallel",),
            vmem_limit_bytes=32 * 1024 * 1024),
    )(*args)


def _reference(x, w_qkv, b_qkv, w_o, b_o, adj=None):
    """Pure-JAX reference mirroring the PyTorch forward."""
    F_dim = x.shape[-1]
    qkv = x @ w_qkv.T + b_qkv
    q, k, v = jnp.split(qkv, 3, axis=-1)
    q, k, v = map(jax.nn.relu, (q, k, v))
    scores = jnp.einsum("bnf,bng->bfg", q, k) / math.sqrt(F_dim)
    attn = jax.nn.softmax(scores, axis=-1)
    if adj is not None:
        attn = attn * adj
    y = jnp.einsum("bnf,bfg->bng", v, attn)
    return y @ w_o.T + b_o


if __name__ == "__main__":
    B, N, F_dim = 8, 8, 32
    key = jax.random.PRNGKey(0)
    k_x, k_wq, k_bq, k_wo, k_bo, k_adj = jax.random.split(key, 6)

    x = jax.random.normal(k_x, (B, N, F_dim), dtype=jnp.float32)

    # Deterministic parameter init (PyTorch-Linear-like uniform bound).
    bound = 1.0 / math.sqrt(F_dim)
    w_qkv = jax.random.uniform(k_wq, (3 * F_dim, F_dim), jnp.float32, -bound, bound)
    b_qkv = jax.random.uniform(k_bq, (3 * F_dim,), jnp.float32, -bound, bound)
    w_o = jax.random.uniform(k_wo, (F_dim, F_dim), jnp.float32, -bound, bound)
    b_o = jax.random.uniform(k_bo, (F_dim,), jnp.float32, -bound, bound)
    adj = (jax.random.uniform(k_adj, (F_dim, F_dim)) > 0.5).astype(jnp.float32)

    # f32 MXU operands (default; correct on all generations incl. v5e).
    ref = _reference(x, w_qkv, b_qkv, w_o, b_o)
    out = jax.block_until_ready(channel_attention(x, w_qkv, b_qkv, w_o, b_o))
    assert out.shape == (B, N, F_dim)
    err = float(jnp.max(jnp.abs(out - ref)))
    assert err < 1e-2, f"f32 path max abs err = {err}"

    # adj-mask path (attention * adj).
    ref_adj = _reference(x, w_qkv, b_qkv, w_o, b_o, adj=adj)
    out_adj = jax.block_until_ready(
        channel_attention(x, w_qkv, b_qkv, w_o, b_o, adj=adj))
    err_adj = float(jnp.max(jnp.abs(out_adj - ref_adj)))
    assert err_adj < 1e-2, f"adj path max abs err = {err_adj}"

    # bf16 MXU operands, f32 accumulation (recommended on v6e/v7x).
    out_bf16 = jax.block_until_ready(
        channel_attention(x, w_qkv, b_qkv, w_o, b_o, use_bf16_matmul=True))
    err_bf16 = float(jnp.max(jnp.abs(out_bf16 - ref)))
    assert err_bf16 < 1e-1, f"bf16 path max abs err = {err_bf16}"

    print("KERNEL_OK")
</pallas_src>

<mosaic_0001>
module attributes {stable_mosaic.version = 11 : i64} {
  func.func @kernel(%arg0: i32, %arg1: memref<4x8x32xf32, #tpu.memory_space<vmem>>, %arg2: memref<3x32x32xf32, #tpu.memory_space<vmem>>, %arg3: memref<3x1x32xf32, #tpu.memory_space<vmem>>, %arg4: memref<32x32xf32, #tpu.memory_space<vmem>>, %arg5: memref<1x32xf32, #tpu.memory_space<vmem>>, %arg6: memref<4x8x32xf32, #tpu.memory_space<vmem>>) attributes {dimension_semantics = [#tpu.dimension_semantics<parallel>], iteration_bounds = array<i64: 2>, scalar_prefetch = 0 : i64, scratch_operands = 0 : i64, tpu.core_type = #tpu.core_type<tc>, window_params = [{transform_indices = @transform_0, window_bounds = array<i64: 4, 8, 32>}, {pipeline_mode = #tpu.pipeline_mode<synchronous>, transform_indices = @transform_1, window_bounds = array<i64: 3, 32, 32>}, {pipeline_mode = #tpu.pipeline_mode<synchronous>, transform_indices = @transform_2, window_bounds = array<i64: 3, 1, 32>}, {pipeline_mode = #tpu.pipeline_mode<synchronous>, transform_indices = @transform_3, window_bounds = array<i64: 32, 32>}, {pipeline_mode = #tpu.pipeline_mode<synchronous>, transform_indices = @transform_4, window_bounds = array<i64: 1, 32>}, {transform_indices = @transform_5, window_bounds = array<i64: 4, 8, 32>}]} {
    %c0 = arith.constant 0 : index
    %c0_0 = arith.constant 0 : index
    %c0_1 = arith.constant 0 : index
    %0 = vector.load %arg1[%c0, %c0_0, %c0_1] : memref<4x8x32xf32, #tpu.memory_space<vmem>>, vector<4x8x32xf32>
    %1 = vector.shape_cast %0 : vector<4x8x32xf32> to vector<32x32xf32>
    %c0_2 = arith.constant 0 : index
    %c0_3 = arith.constant 0 : index
    %c0_4 = arith.constant 0 : index
    %2 = vector.load %arg2[%c0_2, %c0_3, %c0_4] : memref<3x32x32xf32, #tpu.memory_space<vmem>>, vector<1x32x32xf32>
    %3 = vector.shape_cast %2 : vector<1x32x32xf32> to vector<32x32xf32>
    %cst = arith.constant dense<0.000000e+00> : vector<32x32xf32>
    %4 = tpu.matmul %1, %3, %cst {dimension_numbers = #tpu.dot_dimension_numbers<[1], [0], [0], [1], [0, 0, 1, 1], [], []>} : vector<32x32xf32>, vector<32x32xf32>, vector<32x32xf32> -> vector<32x32xf32>
    %c0_5 = arith.constant 0 : index
    %c0_6 = arith.constant 0 : index
    %c0_7 = arith.constant 0 : index
    %5 = vector.load %arg3[%c0_5, %c0_6, %c0_7] : memref<3x1x32xf32, #tpu.memory_space<vmem>>, vector<1x1x32xf32>
    %6 = vector.shape_cast %5 : vector<1x1x32xf32> to vector<1x32xf32>
    %7 = vector.broadcast %6 : vector<1x32xf32> to vector<32x32xf32>
    %8 = arith.addf %4, %7 : vector<32x32xf32>
    %cst_8 = arith.constant 0.000000e+00 : f32
    %9 = vector.broadcast %cst_8 : f32 to vector<32x32xf32>
    %10 = arith.maximumf %8, %9 : vector<32x32xf32>
    %11 = vector.shape_cast %10 : vector<32x32xf32> to vector<4x8x32xf32>
    %c1 = arith.constant 1 : index
    %c0_9 = arith.constant 0 : index
    %c0_10 = arith.constant 0 : index
    %12 = vector.load %arg2[%c1, %c0_9, %c0_10] : memref<3x32x32xf32, #tpu.memory_space<vmem>>, vector<1x32x32xf32>
    %13 = vector.shape_cast %12 : vector<1x32x32xf32> to vector<32x32xf32>
    %cst_11 = arith.constant dense<0.000000e+00> : vector<32x32xf32>
    %14 = tpu.matmul %1, %13, %cst_11 {dimension_numbers = #tpu.dot_dimension_numbers<[1], [0], [0], [1], [0, 0, 1, 1], [], []>} : vector<32x32xf32>, vector<32x32xf32>, vector<32x32xf32> -> vector<32x32xf32>
    %c1_12 = arith.constant 1 : index
    %c0_13 = arith.constant 0 : index
    %c0_14 = arith.constant 0 : index
    %15 = vector.load %arg3[%c1_12, %c0_13, %c0_14] : memref<3x1x32xf32, #tpu.memory_space<vmem>>, vector<1x1x32xf32>
    %16 = vector.shape_cast %15 : vector<1x1x32xf32> to vector<1x32xf32>
    %17 = vector.broadcast %16 : vector<1x32xf32> to vector<32x32xf32>
    %18 = arith.addf %14, %17 : vector<32x32xf32>
    %cst_15 = arith.constant 0.000000e+00 : f32
    %19 = vector.broadcast %cst_15 : f32 to vector<32x32xf32>
    %20 = arith.maximumf %18, %19 : vector<32x32xf32>
    %21 = vector.shape_cast %20 : vector<32x32xf32> to vector<4x8x32xf32>
    %c2 = arith.constant 2 : index
    %c0_16 = arith.constant 0 : index
    %c0_17 = arith.constant 0 : index
    %22 = vector.load %arg2[%c2, %c0_16, %c0_17] : memref<3x32x32xf32, #tpu.memory_space<vmem>>, vector<1x32x32xf32>
    %23 = vector.shape_cast %22 : vector<1x32x32xf32> to vector<32x32xf32>
    %cst_18 = arith.constant dense<0.000000e+00> : vector<32x32xf32>
    %24 = tpu.matmul %1, %23, %cst_18 {dimension_numbers = #tpu.dot_dimension_numbers<[1], [0], [0], [1], [0, 0, 1, 1], [], []>} : vector<32x32xf32>, vector<32x32xf32>, vector<32x32xf32> -> vector<32x32xf32>
    %c2_19 = arith.constant 2 : index
    %c0_20 = arith.constant 0 : index
    %c0_21 = arith.constant 0 : index
    %25 = vector.load %arg3[%c2_19, %c0_20, %c0_21] : memref<3x1x32xf32, #tpu.memory_space<vmem>>, vector<1x1x32xf32>
    %26 = vector.shape_cast %25 : vector<1x1x32xf32> to vector<1x32xf32>
    %27 = vector.broadcast %26 : vector<1x32xf32> to vector<32x32xf32>
    %28 = arith.addf %24, %27 : vector<32x32xf32>
    %cst_22 = arith.constant 0.000000e+00 : f32
    %29 = vector.broadcast %cst_22 : f32 to vector<32x32xf32>
    %30 = arith.maximumf %28, %29 : vector<32x32xf32>
    %31 = vector.shape_cast %30 : vector<32x32xf32> to vector<4x8x32xf32>
    %cst_23 = arith.constant dense<0.000000e+00> : vector<4x32x32xf32>
    %32 = tpu.matmul %11, %21, %cst_23 {dimension_numbers = #tpu.dot_dimension_numbers<[1], [1], [2], [2], [0, 0, 0, 2, 1, 2], [0], [0]>} : vector<4x8x32xf32>, vector<4x8x32xf32>, vector<4x32x32xf32> -> vector<4x32x32xf32>
    %cst_24 = arith.constant 0.176776692 : f32
    %33 = vector.broadcast %cst_24 : f32 to vector<4x32x32xf32>
    %34 = arith.mulf %32, %33 : vector<4x32x32xf32>
    %cst_25 = arith.constant dense<0xFF800000> : vector<4x32xf32>
    %35 = vector.multi_reduction <maximumf>, %34, %cst_25 [2] : vector<4x32x32xf32> to vector<4x32xf32>
    %36 = vector.shape_cast %35 : vector<4x32xf32> to vector<4x32x1xf32>
    %37 = vector.broadcast %36 : vector<4x32x1xf32> to vector<4x32x32xf32>
    %38 = arith.subf %34, %37 : vector<4x32x32xf32>
    %39 = math.exp %38 : vector<4x32x32xf32>
    %cst_26 = arith.constant dense<0.000000e+00> : vector<4x32xf32>
    %40 = vector.multi_reduction <add>, %39, %cst_26 [2] : vector<4x32x32xf32> to vector<4x32xf32>
    %41 = vector.shape_cast %40 : vector<4x32xf32> to vector<4x32x1xf32>
    %42 = tpu.reciprocal %41 {approx = true} : vector<4x32x1xf32> -> vector<4x32x1xf32>
    %43 = vector.broadcast %42 : vector<4x32x1xf32> to vector<4x32x32xf32>
    %44 = arith.mulf %39, %43 : vector<4x32x32xf32>
    %cst_27 = arith.constant dense<0.000000e+00> : vector<4x8x32xf32>
    %45 = tpu.matmul %31, %44, %cst_27 {dimension_numbers = #tpu.dot_dimension_numbers<[2], [1], [1], [2], [0, 0, 0, 1, 1, 2], [0], [0]>} : vector<4x8x32xf32>, vector<4x32x32xf32>, vector<4x8x32xf32> -> vector<4x8x32xf32>
    %46 = vector.shape_cast %45 : vector<4x8x32xf32> to vector<32x32xf32>
    %c0_28 = arith.constant 0 : index
    %c0_29 = arith.constant 0 : index
    %47 = vector.load %arg4[%c0_28, %c0_29] : memref<32x32xf32, #tpu.memory_space<vmem>>, vector<32x32xf32>
    %cst_30 = arith.constant dense<0.000000e+00> : vector<32x32xf32>
    %48 = tpu.matmul %46, %47, %cst_30 {dimension_numbers = #tpu.dot_dimension_numbers<[1], [0], [0], [1], [0, 0, 1, 1], [], []>} : vector<32x32xf32>, vector<32x32xf32>, vector<32x32xf32> -> vector<32x32xf32>
    %c0_31 = arith.constant 0 : index
    %c0_32 = arith.constant 0 : index
    %49 = vector.load %arg5[%c0_31, %c0_32] : memref<1x32xf32, #tpu.memory_space<vmem>>, vector<1x32xf32>
    %50 = vector.broadcast %49 : vector<1x32xf32> to vector<32x32xf32>
    %51 = arith.addf %48, %50 : vector<32x32xf32>
    %52 = vector.shape_cast %51 : vector<32x32xf32> to vector<4x8x32xf32>
    %c0_33 = arith.constant 0 : index
    %c0_34 = arith.constant 0 : index
    %c0_35 = arith.constant 0 : index
    %53 = vector.load %arg6[%c0_33, %c0_34, %c0_35] : memref<4x8x32xf32, #tpu.memory_space<vmem>>, vector<4x8x32xf32>
    tpu.vector_store %arg6[%c0_33, %c0_34, %c0_35], %52 {strides = array<i32>} : memref<4x8x32xf32, #tpu.memory_space<vmem>>, vector<4x8x32xf32>,
    return
  }
  func.func @transform_0(%arg0: i32) -> (i32, i32, i32) {
    %c0_i32 = arith.constant 0 : i32
    %c0_i32_0 = arith.constant 0 : i32
    %c0_i32_1 = arith.constant 0 : i32
    return %arg0, %c0_i32, %c0_i32_0 : i32, i32, i32
  }
  func.func @transform_1(%arg0: i32) -> (i32, i32, i32) {
    %c0_i32 = arith.constant 0 : i32
    %c0_i32_0 = arith.constant 0 : i32
    %c0_i32_1 = arith.constant 0 : i32
    %c0_i32_2 = arith.constant 0 : i32
    return %c0_i32, %c0_i32_0, %c0_i32_1 : i32, i32, i32
  }
  func.func @transform_2(%arg0: i32) -> (i32, i32, i32) {
    %c0_i32 = arith.constant 0 : i32
    %c0_i32_0 = arith.constant 0 : i32
    %c0_i32_1 = arith.constant 0 : i32
    %c0_i32_2 = arith.constant 0 : i32
    return %c0_i32, %c0_i32_0, %c0_i32_1 : i32, i32, i32
  }
  func.func @transform_3(%arg0: i32) -> (i32, i32) {
    %c0_i32 = arith.constant 0 : i32
    %c0_i32_0 = arith.constant 0 : i32
    %c0_i32_1 = arith.constant 0 : i32
    return %c0_i32, %c0_i32_0 : i32, i32
  }
  func.func @transform_4(%arg0: i32) -> (i32, i32) {
    %c0_i32 = arith.constant 0 : i32
    %c0_i32_0 = arith.constant 0 : i32
    %c0_i32_1 = arith.constant 0 : i32
    return %c0_i32, %c0_i32_0 : i32, i32
  }
  func.func @transform_5(%arg0: i32) -> (i32, i32, i32) {
    %c0_i32 = arith.constant 0 : i32
    %c0_i32_0 = arith.constant 0 : i32
    %c0_i32_1 = arith.constant 0 : i32
    return %arg0, %c0_i32, %c0_i32_0 : i32, i32, i32
  }
}

</mosaic_0001>

<bundles_post_ra>
// kernel: tpu_custom_call.1
= control target key start
LH: loop header
LB: loop body
LE: loop exit
PB: predicated region body
PF: predicated region fallthrough
CT: control target
= control target key end

     0   :  { %10 = vsyncpa [#allocation3], 0  ;;  %s2960_s0 = inlined_call_operand.hbm [shape: f32[8,8,32], index: 0, kind: input, shape index: {}]   ;;  %s2961_s1 = inlined_call_operand.hbm [shape: f32[3,32,32], index: 1, kind: input, shape index: {}]   ;;  %s2962_s2 = inlined_call_operand.vmem [shape: f32[3,1,32], index: 2, kind: input, shape index: {}]   ;;  %s2963_s3 = inlined_call_operand.hbm [shape: f32[32,32], index: 3, kind: input, shape index: {}]   ;;  %s2964_s4 = inlined_call_operand.vmem [shape: f32[1,32], index: 4, kind: input, shape index: {}]   ;;  %s2965_s5 = inlined_call_operand.hbm [shape: f32[8,8,32], index: 5, kind: output, shape index: {}]  }
   0x1   :  { %12 = vsyncpa [#allocation3 + $0x1], 0 }
   0x2   :  { %13 = vsyncpa [#allocation6], 0 }
   0x3   :  { %14 = vsyncpa [#allocation4], 0 }
   0x4   :  { %16 = vsyncpa [#allocation4 + $0x1], 0  ;;  %s2473_s18 = smov 0   ;;  %s2475_s19 = smov 0  }
   0x5   :  { %s2477_s20 = smov 0   ;;  %s2479_s21 = smov 0  }
   0x6 LB: > { %s2494_s22 = sadd.s32 4294967295, %s2430_s21   ;;  %s1814_s23 = sadd.s32 4294967294, %s2430_s21   ;;  %s2430_s21 = sphi %s2479_s21, %s2985_s21   ;;  %s2426_s20 = sphi %s2477_s20, %s2984_s20   ;;  %s2422_s19 = sphi %s2475_s19, %s2983_s19   ;;  %s2418_s18 = sphi %s2473_s18, %s2982_s18  }
   0x7   : > { %p42_p0 = scmp.ne.s32.totalorder %s2422_s19, %s2418_s18  ;;  %p2966_p1 = scmp.eq.s32.totalorder %s2494_s22, 0 }
   0x8   : > { %p156_p3 = scmp.eq.s32.totalorder %s1814_s23, 1  ;;  %p1815_p5 = scmp.ge.s32.totalorder %s2430_s21, 1 }
   0x9   : > { %p2503_p4 = por %p2966_p1, %p42_p0  ;;  %p163_p7 = scmp.lt.s32.totalorder %s2430_s21, 3 }
   0xa   : > { %p2508_p6 = por %p156_p3, %p42_p0  ;;  %s2432_s27 = smov [#allocation5]  }
   0xb   : > { %s2969_s24 = scalar_select %p2503_p4, 1, 0 }
   0xc   : > { %s2970_s25 = scalar_select %p2508_p6, 1, 0 }
   0xd   : > { %p2513_p8 = pnand %p1815_p5, %p163_p7  ;;  %s175_s28 = sshll.u32 %s2432_s27, 4  ;;  %s2517_s28 = int_to_ptr.vmem [resolvable:$true] %s175_s28 }
   0xe   : > { %s2433_s30 = smov [#allocation7]   ;;  %s2274_s9 = scalar_lea.hbm %s2961_s1, 1536 }
   0xf   : > { %p2148_p9 = pneg %p2513_p8  ;;  %s191_s6 = sshll.u32 %s2433_s30, 4  ;;  %s2528_s6 = int_to_ptr.vmem [resolvable:$true] %s191_s6 }
  0x10   : > { %p2275_p12 = scmp.ne.s32.totalorder %s2961_s1, %s2274_s9  ;;  %p2281_p5 = scmp.lt.u32.totalorder %s2274_s9, %s2961_s1 }
  0x11   : > { %p2524_p11 = pnand %p2148_p9, %p2966_p1 }
  0x13   : > { %p2276_p13 = pneg %p2524_p11 }
  0x15   : > { %p2277_p0 = pnand %p2276_p13, %p2275_p12 }
  0x17   : > { %p2278_p3 = pneg %p2277_p0 }
  0x19   : > { %p2283_p7 = pnand %p2281_p5, %p2278_p3 }
  0x1b   : > { %2286 = shalt.err (!%p2283_p7)
}
  0x1c   : > { %s2287_s14 = scalar_lea.vmem %s2517_s28, 1536  ;;  %p2295_p2 = scmp.lt.s32.totalorder %s2517_s28, %s2517_s28 }
  0x1d   : > { %p2288_p9 = scmp.ne.s32.totalorder %s2517_s28, %s2287_s14  ;;  %p2296_p12 = scmp.lt.s32.totalorder %s2287_s14, %s2287_s14 }
  0x1f   : > { %p2290_p10 = pnand %p2288_p9, %p2276_p13  ;;  %p2297_p0 = por %p2296_p12, %p2295_p2 }
  0x21   : > { %p2291_p1 = pneg %p2290_p10 }
  0x23   : > { %p2298_p6 = pnand %p2297_p0, %p2291_p1 }
  0x25   : > { %2301 = shalt.err (!%p2298_p6)
}
  0x26   : > { %s2434_s15 = smov 128   ;;  %s2435_s16 = smov 8  }
  0x27   : > { %2151 = dma.hbm_to_vmem [thread:$0]  (!%p2524_p11), %s2961_s1, 1536, %s2517_s28, [#allocation6], %s2434_s15, %s2434_s15, %s2435_s16  }
  0x28   : > { %s2302_s7 = scalar_lea.hbm %s2963_s3, 512 }
  0x29   : > { %p2303_p1 = scmp.ne.s32.totalorder %s2963_s3, %s2302_s7  ;;  %p2309_p10 = scmp.lt.u32.totalorder %s2302_s7, %s2963_s3 }
  0x2b   : > { %p2305_p2 = pnand %p2303_p1, %p2276_p13 }
  0x2d   : > { %p2306_p6 = pneg %p2305_p2 }
  0x2f   : > { %p2311_p3 = pnand %p2309_p10, %p2306_p6 }
  0x31   : > { %2314 = shalt.err (!%p2311_p3)
}
  0x32   : > { %s2315_s28 = scalar_lea.vmem %s2528_s6, 512  ;;  %p2323_p12 = scmp.lt.s32.totalorder %s2528_s6, %s2528_s6 }
  0x33   : > { %p2316_p5 = scmp.ne.s32.totalorder %s2528_s6, %s2315_s28  ;;  %p2324_p0 = scmp.lt.s32.totalorder %s2315_s28, %s2315_s28 }
  0x35   : > { %p2318_p7 = pnand %p2316_p5, %p2276_p13  ;;  %p2325_p1 = por %p2324_p0, %p2323_p12 }
  0x37   : > { %p2319_p9 = pneg %p2318_p7 }
  0x39   : > { %p2326_p2 = pnand %p2325_p1, %p2319_p9 }
  0x3b   : > { %2329 = shalt.err (!%p2326_p2)
}
  0x3c   : > { %2154 = dma.hbm_to_vmem [thread:$0]  (!%p2524_p11), %s2963_s3, 512, %s2528_s6, [#allocation6], %s2434_s15, %s2434_s15, %s2435_s16  }
  0x3d   : > { %s2589_s29 = sadd.s32 1, %s2430_s21   ;;  %s29_s14 = sadd.s32 1, %s2426_s20 }
  0x3e   : > { %s26_s17 = ssub.s32 %s2430_s21, %s2589_s29  ;;  %p36_p13 = scmp.ne.s32.totalorder %s2426_s20, %s2422_s19 }
  0x3f   : > { %p27_p6 = scmp.eq.s32.totalorder %s26_s17, 0  ;;  %p37_p10 = scmp.eq.s32.totalorder %s2430_s21, 0 }
  0x40   : > { %p2973_p3 = scmp.eq.s32.totalorder %s2494_s22, 1  ;;  %p2165_p7 = scmp.lt.s32.totalorder %s2430_s21, 2 }
  0x41   : > { %s2605_s27 = scalar_select %p27_p6, %s2426_s20, %s29_s14  }
  0x42   : > { %p2599_p5 = por %p2973_p3, %p36_p13  ;;  %p38_p9 = por %p37_p10, %p36_p13 }
  0x43   : > { %s208_s30 = sand.u32 1, %s2426_s20   ;;  %s1874_s6 = sshll.u32 %s2430_s21, 9 }
  0x44   : > { %s2974_s23 = scalar_select %p2599_p5, 1, 0 }
  0x45   : > { %s1819_s7 = sshll.u32 %s208_s30, 5  ;;  %s2612_s10 = scalar_lea.hbm %s2960_s0, %s1874_s6 }
  0x46   : > { %s212_s11 = scalar_lea.vmem [#allocation2], %s1819_s7  ;;  %p2616_p11 = pnand %p2165_p7, %p38_p9 }
  0x47   : > { %s219_s28 = sshll.u32 %s212_s11, 4  ;;  %s2620_s13 = scalar_lea.sflag [#allocation3], %s208_s30  ;;  %s2614_s28 = int_to_ptr.vmem [resolvable:$true] %s219_s28 }
  0x48   : > { %s2330_s14 = scalar_lea.hbm %s2612_s10, 512  ;;  %p2332_p0 = pneg %p2616_p11 }
  0x49   : > { %p2331_p12 = scmp.ne.s32.totalorder %s2612_s10, %s2330_s14  ;;  %s2335_s6 = scalar_lea.hbm %s2960_s0, 1024 }
  0x4a   : > { %p2336_p13 = scmp.lt.u32.totalorder %s2612_s10, %s2960_s0  ;;  %p2337_p6 = scmp.lt.u32.totalorder %s2335_s6, %s2330_s14 }
  0x4b   : > { %p2333_p1 = pnand %p2332_p0, %p2331_p12  ;;  %p2339_p3 = scmp.lt.u32.totalorder %s2330_s14, %s2612_s10 }
  0x4c   : > { %p2338_p10 = por %p2337_p6, %p2336_p13 }
  0x4d   : > { %p2334_p2 = pneg %p2333_p1 }
  0x4e   : > { %p2340_p7 = por %p2339_p3, %p2338_p10 }
  0x50   : > { %p2341_p9 = pnand %p2340_p7, %p2334_p2 }
  0x52   : > { %2344 = shalt.err (!%p2341_p9)
}
  0x53   : > { %s2345_s30 = scalar_lea.vmem %s2614_s28, 512  ;;  %s2436_s11 = smov [#allocation2]  }
  0x54   : > { %p2346_p12 = scmp.ne.s32.totalorder %s2614_s28, %s2345_s30  ;;  %s2350_s17 = sshll.u32 %s2436_s11, 4  ;;  %s2351_s17 = int_to_ptr.vmem [resolvable:$false] %s2350_s17 }
  0x55   : > { %s2352_s7 = scalar_lea.vmem %s2351_s17, 1024  ;;  %p2353_p4 = scmp.lt.s32.totalorder %s2614_s28, %s2351_s17 }
  0x56   : > { %p2348_p1 = pnand %p2346_p12, %p2332_p0  ;;  %p2354_p13 = scmp.lt.s32.totalorder %s2352_s7, %s2345_s30 }
  0x58   : > { %p2349_p5 = pneg %p2348_p1  ;;  %p2355_p6 = por %p2354_p13, %p2353_p4 }
  0x5a   : > { %p2356_p10 = pnand %p2355_p6, %p2349_p5 }
  0x5c   : > { %2359 = shalt.err (!%p2356_p10)
}
  0x5d   : > { %2158 = dma.hbm_to_vmem [thread:$0]  (!%p2616_p11), %s2612_s10, 512, %s2614_s28, %s2620_s13, %s2434_s15, %s2434_s15, %s2435_s16  }
  0x5e   : > { %231 = sbr.rel (%p2513_p8) target bundleno = 1493 (0x5d5), region = 40  ;;  %s2654_s14 = sand.u32 (!%p2513_p8), 1, %s2422_s19  }
  0x5f   : > { %s1823_s6 = sshll.u32 (!%p2513_p8), %s2654_s14, 5  ;;  %s234_s8 = scalar_lea.sflag (!%p2513_p8), [#allocation3], %s2654_s14 }
  0x60   : > { %s2660_s12 = scalar_lea.vmem (!%p2513_p8), [#allocation2], %s1823_s6  ;;  %p2976_p4 = scmp.ne.s32.totalorder (!%p2513_p8), %s2969_s24, 0 }
  0x65   : > { %2405 = dma.done.wait (%p2976_p4), %s234_s8, 512  }
  0x66   : > { %2407 = vsyncadd (%p2976_p4), %s234_s8, 4294966784  ;;  %p2977_p5 = scmp.eq.s32.totalorder %s2494_s22, 0 }
  0x68   : > { %2409 = dma.done.wait (%p2977_p5), [#allocation6], 2048   ;;  %p2978_p8 = pmov %p2977_p5 }
  0x69   : > { %vm289_vm0 = vcmask 261120   ;;  %v278_v0 = vld [vmem:[#allocation5] sm:$0xff]  ;;  %v279_v1 = vld [vmem:[#allocation5 + $0x8] sm:$0xff]  ;;  %v280_v2 = vld [vmem:[#allocation5 + $0x10] sm:$0xff]  ;;  %vm627_vm1 = vcmask 64512   ;;  %vm2438_vm2 = vmmov 0  }
  0x6a   : > { %2411 = vsyncadd (%p2978_p8), [#allocation6], 4294965248  ;;  %v2080_v3 = vpack.c.bf16 %v279_v1, %v278_v0  ;;  %v281_v4 = vld [vmem:[#allocation5 + $0x18] sm:$0xff]  ;;  %v274_v5 = vld [vmem:[%s2660_s12] sm:$0xff]  ;;  %s271_s30 = scalar_lea.vmem [#allocation8], %s1823_s6  ;;  %s1875_s17 = sshll.u32 %s2494_s22, 9 }
  0x6b   : > { %v2084_v6 = vpack.c.bf16 %v281_v4, %v280_v2  ;;  %1956 = vmatprep.mubr.msk.f32.mxu0 %vm289_vm0, %v274_v5  ;;  %v392_v7 = vld [vmem:[#allocation5 + $0x20] sm:$0xff]  ;;  %1970 = vmatprep.mubr.msk.f32.mxu1 %vm289_vm0, %v274_v5  ;;  %v393_v8 = vld [vmem:[#allocation5 + $0x28] sm:$0xff]  ;;  %v394_v9 = vld [vmem:[#allocation5 + $0x30] sm:$0xff]  ;;  %s1722_s11 = sshll.u32 %s271_s30, 4  ;;  %s1709_s6 = scalar_lea.sflag [#allocation4], %s2654_s14  ;;  %s2909_s11 = int_to_ptr.vmem [resolvable:$true] %s1722_s11 }
  0x6c   : > { %2081 = vmatprep.subr.bf16.mxu0 %v2080_v3  ;;  %v395_v10 = vld [vmem:[#allocation5 + $0x38] sm:$0xff]  ;;  %v2088_v11 = vpack.c.bf16 %v393_v8, %v392_v7  ;;  %v275_v13 = vld [vmem:[%s2660_s12 + $0x8] sm:$0xff]  ;;  %v276_v14 = vld [vmem:[%s2660_s12 + $0x10] sm:$0xff]  ;;  %s2360_s22 = scalar_lea.vmem %s2909_s11, 512  ;;  %p2979_p0 = scmp.ne.s32.totalorder %s2974_s23, 0 }
  0x6d   : > { %2083 = vmatpush3.bf16.msra.mxu0 %v2080_v3  ;;  %v2092_v12 = vpack.c.bf16 %v395_v10, %v394_v9  ;;  %v277_v15 = vld [vmem:[%s2660_s12 + $0x18] sm:$0xff]  ;;  %v1827_v16 = vld [vmem:[%s2962_s2] ss:$0 sm:$0xff]  ;;  %v1833_v20 = vld [vmem:[%s2962_s2 + $0x1] ss:$0 sm:$0xff]  ;;  %s2914_s12 = scalar_lea.hbm %s2965_s5, %s1875_s17  ;;  %p2361_p11 = scmp.ne.s32.totalorder %s2909_s11, %s2360_s22 }
  0x6e   : > { %2085 = vmatprep.subr.bf16.mxu0 %v2084_v6  ;;  %2089 = vmatprep.subr.bf16.mxu1 %v2088_v11  ;;  %v494_v29 = vld [vmem:[#allocation5 + $0x40] sm:$0xff]  ;;  %v495_v30 = vld [vmem:[#allocation5 + $0x48] sm:$0xff]  ;;  %v496_v34 = vld [vmem:[#allocation5 + $0x50] sm:$0xff]  ;;  %s2440_s24 = smov [#allocation8]  }
  0x6f   : > { %2091 = vmatpush3.bf16.msra.mxu1 %v2088_v11  ;;  %v2096_v33 = vpack.c.bf16 %v495_v30, %v494_v29  ;;  %v497_v35 = vld [vmem:[#allocation5 + $0x58] sm:$0xff]  ;;  %p2362_p2 = pnand %p2361_p11, %p2979_p0  ;;  %s2364_s26 = sshll.u32 %s2440_s24, 4  ;;  %s2365_s26 = int_to_ptr.vmem [resolvable:$false] %s2364_s26 }
  0x70   : > { %2093 = vmatprep.subr.bf16.mxu1 %v2092_v12  ;;  %v2100_v37 = vpack.c.bf16 %v497_v35, %v496_v34  ;;  %s2366_s15 = scalar_lea.vmem %s2365_s26, 1024  ;;  %p2367_p7 = scmp.lt.s32.totalorder %s2909_s11, %s2365_s26 }
  0x71   : > { %2087 = vmatpush3.bf16.msra.mxu0 %v2084_v6  ;;  %p2363_p3 = pneg %p2362_p2  ;;  %p2368_p9 = scmp.lt.s32.totalorder %s2366_s15, %s2360_s22 }
  0x72   : > { %2097 = vmatprep.subr.bf16.mxu0 %v2096_v33 }
  0x73   : > { %2095 = vmatpush3.bf16.msra.mxu1 %v2092_v12  ;;  %p2369_p12 = por %p2368_p9, %p2367_p7 }
  0x74   : > { %1957 = vmatmul.mubr.msk.f32.vlgmr.msra.gmra.mrb[0].mxu0 %vm289_vm0, %v275_v13 }
  0x75   : > { %1959 = vmatprep.mubr.msk.f32.mxu0 %vm289_vm0, %v276_v14  ;;  %2099 = vmatpush3.bf16.msra.mxu0 %v2096_v33  ;;  %p2370_p1 = pnand %p2369_p12, %p2363_p3 }
  0x76   : > { %1971 = vmatmul.mubr.msk.f32.vlgmr.msra.gmra.mrb[0].mxu1 %vm289_vm0, %v275_v13  ;;  %2101 = vmatprep.subr.bf16.mxu0 %v2100_v37 }
  0x77   : > { %1973 = vmatprep.mubr.msk.f32.mxu1 %vm289_vm0, %v276_v14 }
  0x78   : > { %1960 = vmatmul.mubr.msk.f32.gmra.mrb[2].mxu0 %vm289_vm0, %v277_v15 }
  0x79   : > { %1984 = vmatprep.mubr.msk.f32.mxu0 %vm289_vm0, %v274_v5  ;;  %2103 = vmatpush3.bf16.msra.mxu0 %v2100_v37 }
  0x7a   : > { %1974 = vmatmul.mubr.msk.f32.gmra.mrb[2].mxu1 %vm289_vm0, %v277_v15 }
  0x7c   : > { %1985 = vmatmul.mubr.msk.f32.vlgmr.msra.gmra.mrb[4].mxu0 %vm289_vm0, %v275_v13 }
  0x7d   : > { %1987 = vmatprep.mubr.msk.f32.mxu0 %vm289_vm0, %v276_v14 }
  0x80   : > { %1988 = vmatmul.mubr.msk.f32.gmra.mrb[6].mxu0 %vm289_vm0, %v277_v15 }
 0x147   : > { %v1958_v17 = vpop.f32.mrb[0].mxu0 }
 0x148   : > { %v368_v18 = vpop.f32.mrb[1].mxu0  ;;  %v374_v38 = vadd.f32 %v1958_v17, %v1827_v16 }
 0x149   : > { %v369_v19 = vadd.f32 %v1827_v16, %v368_v18  ;;  %v1972_v21 = vpop.f32.mrb[0].mxu1 }
 0x14a   : > { %v470_v24 = vpop.f32.mrb[1].mxu1  ;;  %v476_v32 = vadd.f32 %v1972_v21, %v1833_v20  ;;  %v388_v40 = vmax.f32 %v374_v38, 0.0 }
 0x14b   : > { %v387_v22 = vmax.f32 %v369_v19, 0.0  ;;  %v1961_v23 = vpop.f32.mrb[2].mxu0  ;;  %v471_v26 = vadd.f32 %v1833_v20, %v470_v24 }
 0x14c   : > { %v378_v25 = vpop.f32.mrb[3].mxu0  ;;  %v490_v36 = vmax.f32 %v476_v32, 0.0  ;;  %v384_v39 = vadd.f32 %v1961_v23, %v1827_v16 }
 0x14d   : > { %595 = vxpose.xlu0.b32.start.end [1/1] (short) (narrow) %v387_v22, 32  ;;  %v379_v27 = vadd.f32 %v1827_v16, %v378_v25  ;;  %v489_v28 = vmax.f32 %v471_v26, 0.0  ;;  %v1975_v42 = vpop.f32.mrb[2].mxu1 }
 0x14e   : > { %1998 = vmatprep.subr.mxu0 %v490_v36  ;;  %v390_v41 = vmax.f32 %v384_v39, 0.0  ;;  %v486_v43 = vadd.f32 %v1975_v42, %v1833_v20  ;;  %v480_v44 = vpop.f32.mrb[3].mxu1 }
 0x14f   : > { %v389_v31 = vmax.f32 %v379_v27, 0.0  ;;  %1990 = vmatprep.subr.mxu1 %v489_v28  ;;  %1999 = vmatpush3.msra.mxu0 %v490_v36  ;;  %v481_v45 = vadd.f32 %v1833_v20, %v480_v44  ;;  %v2708_v0 = vpop.f32.mrb[4].mxu0 }
 0x150   : > { %1991 = vmatpush3.msra.mxu1 %v489_v28  ;;  %v492_v46 = vmax.f32 %v486_v43, 0.0  ;;  %v2710_v1 = vpop.f32.mrb[5].mxu0 }
 0x151   : > { %854 = vxpose.xlu1.b32.start.end [1/1] (short) (narrow) %v389_v31, 32  ;;  %v491_v47 = vmax.f32 %v481_v45, 0.0 }
 0x152   : > { %2014 = vmatprep.subr.mxu0 %v492_v46 }
 0x153   : > { %2006 = vmatprep.subr.mxu1 %v491_v47  ;;  %v2712_v2 = vpop.f32.mrb[6].mxu0 }
 0x154   : > { %v2714_v3 = vpop.f32.mrb[7].mxu0 }
 0x15a   : > { %725 = vxpose.xlu0.b32.start.end [1/1] (short) (narrow) %v388_v40, 32 }
 0x15e   : > { %983 = vxpose.xlu1.b32.start.end [1/1] (short) (narrow) %v390_v41, 32 }
 0x1cd   : > { %v611_v48 = vpop.trf.xlu0 }
 0x1ce   : > { %1992 = vmatprep.mubr.msk.f32.mxu1 %vm627_vm1, %v611_v48 }
 0x1d1   : > { %v612_v49 = vpop.trf.xlu0  ;;  %v870_v50 = vpop.trf.xlu1 }
 0x1d2   : > { %1993 = vmatmul.mubr.msk.f32.vlgmr.msra.gmra.mrb[4].mxu1 %vm627_vm1, %v612_v49 }
 0x1d3   : > { %2007 = vmatpush3.msra.mxu1 %v491_v47 }
 0x1d5   : > { %v613_v51 = vpop.trf.xlu0  ;;  %v871_v52 = vpop.trf.xlu1 }
 0x1d6   : > { %1995 = vmatprep.mubr.msk.f32.mxu1 %vm627_vm1, %v613_v51 }
 0x1d9   : > { %v614_v53 = vpop.trf.xlu0  ;;  %v872_v54 = vpop.trf.xlu1 }
 0x1da   : > { %1996 = vmatmul.mubr.msk.f32.gmra.mrb[6].mxu1 %vm627_vm1, %v614_v53 }
 0x1db   : > { %2008 = vmatprep.mubr.msk.f32.mxu1 %vm627_vm1, %v870_v50 }
 0x1dd   : > { %v741_v55 = vpop.trf.xlu0  ;;  %v873_v56 = vpop.trf.xlu1 }
 0x1de   : > { %2000 = vmatprep.mubr.msk.f32.mxu0 %vm627_vm1, %v741_v55  ;;  %2009 = vmatmul.mubr.msk.f32.vlgmr.msra.gmra.mrb[8].mxu1 %vm627_vm1, %v871_v52 }
 0x1df   : > { %2011 = vmatprep.mubr.msk.f32.mxu1 %vm627_vm1, %v872_v54 }
 0x1e1   : > { %v742_v57 = vpop.trf.xlu0  ;;  %v999_v58 = vpop.trf.xlu1 }
 0x1e2   : > { %2001 = vmatmul.mubr.msk.f32.vlgmr.msra.gmra.mrb[8].mxu0 %vm627_vm1, %v742_v57  ;;  %2012 = vmatmul.mubr.msk.f32.gmra.mrb[10].mxu1 %vm627_vm1, %v873_v56 }
 0x1e3   : > { %2015 = vmatpush3.msra.mxu0 %v492_v46 }
 0x1e5   : > { %v743_v59 = vpop.trf.xlu0  ;;  %v1000_v60 = vpop.trf.xlu1 }
 0x1e6   : > { %2003 = vmatprep.mubr.msk.f32.mxu0 %vm627_vm1, %v743_v59 }
 0x1e9   : > { %v744_v61 = vpop.trf.xlu0  ;;  %v1001_v62 = vpop.trf.xlu1 }
 0x1ea   : > { %2004 = vmatmul.mubr.msk.f32.gmra.mrb[10].mxu0 %vm627_vm1, %v744_v61 }
 0x1eb   : > { %2016 = vmatprep.mubr.msk.f32.mxu0 %vm627_vm1, %v999_v58 }
 0x1ed   : > { %v1002_v63 = vpop.trf.xlu1 }
 0x1ee   : > { %2017 = vmatmul.mubr.msk.f32.vlgmr.msra.gmra.mrb[12].mxu0 %vm627_vm1, %v1000_v60 }
 0x1ef   : > { %2019 = vmatprep.mubr.msk.f32.mxu0 %vm627_vm1, %v1001_v62 }
 0x1f2   : > { %2020 = vmatmul.mubr.msk.f32.gmra.mrb[14].mxu0 %vm627_vm1, %v1002_v63 }
 0x2a5   : > { %v1994_v4 = vpop.f32.mrb[4].mxu1 }
 0x2a6   : > { %v706_v5 = vpop.f32.mrb[5].mxu1  ;;  %v1113_v17 = vmul.f32 0.17677669, %v1994_v4 }
 0x2a7   : > { %v2716_v6 = vmul.f32 0.17677669, %v706_v5 }
 0x2a8   : > { %v1131_v20 = vsel %vm289_vm0, %v1113_v17, -inf }
 0x2a9   : > { %v1128_v7 = vsel %vm289_vm0, %v2716_v6, -inf }
 0x2aa   : > { %1129 = vmax.xlane.f32.xlu0 %v1128_v7 }
 0x2ad   : > { %v1997_v8 = vpop.f32.mrb[6].mxu1 }
 0x2ae   : > { %v716_v9 = vpop.f32.mrb[7].mxu1  ;;  %v2735_v32 = vmul.f32 0.17677669, %v1997_v8 }
 0x2af   : > { %v2727_v26 = vmul.f32 0.17677669, %v716_v9 }
 0x2b0   : > { %v1137_v38 = vsel %vm289_vm0, %v2735_v32, -inf }
 0x2b1   : > { %v2010_v10 = vpop.f32.mrb[8].mxu1  ;;  %v1134_v33 = vsel %vm289_vm0, %v2727_v26, -inf }
 0x2b2   : > { %v964_v11 = vpop.f32.mrb[9].mxu1  ;;  %v2749_v41 = vmul.f32 0.17677669, %v2010_v10 }
 0x2b3   : > { %v2745_v39 = vmul.f32 0.17677669, %v964_v11 }
 0x2b4   : > { %v1155_v46 = vsel %vm289_vm0, %v2749_v41, -inf }
 0x2b5   : > { %v2002_v12 = vpop.f32.mrb[8].mxu0  ;;  %v2013_v13 = vpop.f32.mrb[10].mxu1  ;;  %v1152_v43 = vsel %vm289_vm0, %v2745_v39, -inf }
 0x2b6   : > { %v1117_v14 = vmul.f32 0.17677669, %v2002_v12  ;;  %v835_v15 = vpop.f32.mrb[9].mxu0  ;;  %v974_v16 = vpop.f32.mrb[11].mxu1  ;;  %v2757_v45 = vmul.f32 0.17677669, %v2013_v13 }
 0x2b7   : > { %v1116_v19 = vmul.f32 0.17677669, %v835_v15  ;;  %v2751_v42 = vmul.f32 0.17677669, %v974_v16 }
 0x2b8   : > { %v1143_v18 = vsel %vm289_vm0, %v1117_v14, -inf  ;;  %v1161_v50 = vsel %vm289_vm0, %v2757_v45, -inf }
 0x2b9   : > { %1144 = vmax.xlane.f32.xlu1 %v1143_v18  ;;  %v1140_v25 = vsel %vm289_vm0, %v1116_v19, -inf  ;;  %v1158_v47 = vsel %vm289_vm0, %v2751_v42, -inf }
 0x2bd   : > { %1132 = vmax.xlane.f32.xlu1 %v1131_v20  ;;  %v2005_v21 = vpop.f32.mrb[10].mxu0 }
 0x2be   : > { %v2722_v22 = vmul.f32 0.17677669, %v2005_v21  ;;  %v845_v23 = vpop.f32.mrb[11].mxu0 }
 0x2bf   : > { %v2724_v24 = vmul.f32 0.17677669, %v845_v23 }
 0x2c0   : > { %v1149_v29 = vsel %vm289_vm0, %v2722_v22, -inf }
 0x2c1   : > { %1141 = vmax.xlane.f32.xlu1 %v1140_v25  ;;  %v1146_v27 = vsel %vm289_vm0, %v2724_v24, -inf  ;;  %v2018_v28 = vpop.f32.mrb[12].mxu0 }
 0x2c2   : > { %1147 = vmax.xlane.f32.xlu0 %v1146_v27  ;;  %v1093_v30 = vpop.f32.mrb[13].mxu0  ;;  %v2739_v35 = vmul.f32 0.17677669, %v2018_v28 }
 0x2c3   : > { %v2733_v31 = vmul.f32 0.17677669, %v1093_v30 }
 0x2c4   : > { %v1167_v40 = vsel %vm289_vm0, %v2739_v35, -inf }
 0x2c5   : > { %1150 = vmax.xlane.f32.xlu1 %v1149_v29  ;;  %v2021_v34 = vpop.f32.mrb[14].mxu0  ;;  %v1164_v37 = vsel %vm289_vm0, %v2733_v31, -inf }
 0x2c6   : > { %1135 = vmax.xlane.f32.xlu0 %v1134_v33  ;;  %v1103_v36 = vpop.f32.mrb[15].mxu0  ;;  %v2763_v48 = vmul.f32 0.17677669, %v2021_v34 }
 0x2c7   : > { %v2755_v44 = vmul.f32 0.17677669, %v1103_v36 }
 0x2c8   : > { %v1173_v51 = vsel %vm289_vm0, %v2763_v48, -inf }
 0x2c9   : > { %1138 = vmax.xlane.f32.xlu1 %v1137_v38  ;;  %v1170_v49 = vsel %vm289_vm0, %v2755_v44, -inf }
 0x2ca   : > { %1165 = vmax.xlane.f32.xlu0 %v1164_v37 }
 0x2cd   : > { %1168 = vmax.xlane.f32.xlu1 %v1167_v40 }
 0x2ce   : > { %1153 = vmax.xlane.f32.xlu0 %v1152_v43 }
 0x2d1   : > { %1156 = vmax.xlane.f32.xlu1 %v1155_v46 }
 0x2d2   : > { %1159 = vmax.xlane.f32.xlu0 %v1158_v47 }
 0x2d5   : > { %1162 = vmax.xlane.f32.xlu1 %v1161_v50 }
 0x2d6   : > { %1171 = vmax.xlane.f32.xlu0 %v1170_v49 }
 0x2d9   : > { %1174 = vmax.xlane.f32.xlu1 %v1173_v51 }
 0x337   : > { %v1130_v55 = vpop.xlane.xlu0 %1129 }
 0x338   : > { %v1176_v58 = vsub.f32 %v2716_v6, %v1130_v55 }
 0x33a   : > { %v1192_v63 = vmul.f32 1.442695, %v1176_v58 }
 0x346   : > { %v1145_v52 = vpop.xlane.xlu1 %1144 }
 0x347   : > { %v1181_v53 = vsub.f32 %v1117_v14, %v1145_v52 }
 0x349   : > { %v1202_v54 = vmul.f32 1.442695, %v1181_v53 }
 0x34a   : > { %v1133_v56 = vpop.xlane.xlu1 %1132 }
 0x34b   : > { %2210 = vpow2.f32 %v1202_v54  ;;  %v1177_v57 = vsub.f32 %v1113_v17, %v1133_v56 }
 0x34d   : > { %v1194_v59 = vmul.f32 1.442695, %v1177_v57 }
 0x34e   : > { %v1142_v60 = vpop.xlane.xlu1 %1141 }
 0x34f   : > { %2212 = vpow2.f32 %v1194_v59  ;;  %v1180_v61 = vsub.f32 %v1116_v19, %v1142_v60  ;;  %v1148_v62 = vpop.xlane.xlu0 %1147 }
 0x350   : > { %v1182_v5 = vsub.f32 %v2724_v24, %v1148_v62 }
 0x351   : > { %v1200_v4 = vmul.f32 1.442695, %v1180_v61 }
 0x352   : > { %v1151_v7 = vpop.xlane.xlu1 %1150  ;;  %v1204_v11 = vmul.f32 1.442695, %v1182_v5 }
 0x353   : > { %2214 = vpow2.f32 %v1200_v4  ;;  %v1183_v8 = vsub.f32 %v2722_v22, %v1151_v7  ;;  %v1136_v9 = vpop.xlane.xlu0 %1135 }
 0x354   : > { %2216 = vpow2.f32 %v1192_v63  ;;  %v1178_v6 = vsub.f32 %v2727_v26, %v1136_v9 }
 0x355   : > { %v2774_v10 = vpop.eup %2210  ;;  %v1206_v12 = vmul.f32 1.442695, %v1183_v8 }
 0x356   : > { %v1139_v13 = vpop.xlane.xlu1 %1138  ;;  %v1239_v14 = vsel %vm289_vm0, %v2774_v10, 0.0  ;;  %v1196_v18 = vmul.f32 1.442695, %v1178_v6 }
 0x357   : > { %2218 = vpow2.f32 %v1206_v12  ;;  %v1179_v15 = vsub.f32 %v2735_v32, %v1139_v13  ;;  %1240 = vadd.xlane.f32.xlu1 %v1239_v14  ;;  %v1166_v16 = vpop.xlane.xlu0 %1165  ;;  %v2437_v13 = vmov 0.0|0.0   ;;  %v2439_v14 = vmov 0.0  }
 0x358   : > { %2220 = vpow2.f32 %v1204_v11  ;;  %v1188_v20 = vsub.f32 %v2733_v31, %v1166_v16  ;;  %2110 = vmatprep.subr.bf16.mxu0 %v2437_v13  ;;  %2104 = vmatprep.subr.bf16.mxu1 %v2437_v13 }
 0x359   : > { %v2780_v17 = vpop.eup %2212  ;;  %v1198_v19 = vmul.f32 1.442695, %v1179_v15  ;;  %2041 = vmatprep.mubr.msk.f32.mxu0 %vm2438_vm2, %v2439_v14  ;;  %2030 = vmatprep.mubr.msk.f32.mxu1 %vm2438_vm2, %v2439_v14 }
 0x35a   : > { %v1169_v21 = vpop.xlane.xlu1 %1168  ;;  %v1227_v22 = vsel %vm289_vm0, %v2780_v17, 0.0  ;;  %v1216_v26 = vmul.f32 1.442695, %v1188_v20 }
 0x35b   : > { %2222 = vpow2.f32 %v1198_v19  ;;  %v1189_v23 = vsub.f32 %v2739_v35, %v1169_v21  ;;  %1228 = vadd.xlane.f32.xlu1 %v1227_v22  ;;  %v1154_v24 = vpop.xlane.xlu0 %1153 }
 0x35c   : > { %2224 = vpow2.f32 %v1196_v18  ;;  %v1184_v28 = vsub.f32 %v2745_v39, %v1154_v24 }
 0x35d   : > { %v2786_v25 = vpop.eup %2214  ;;  %v1218_v27 = vmul.f32 1.442695, %v1189_v23 }
 0x35e   : > { %v1157_v29 = vpop.xlane.xlu1 %1156  ;;  %v1236_v30 = vsel %vm289_vm0, %v2786_v25, 0.0  ;;  %v2791_v31 = vpop.eup %2216  ;;  %v1208_v35 = vmul.f32 1.442695, %v1184_v28 }
 0x35f   : > { %2226 = vpow2.f32 %v1218_v27  ;;  %v1185_v32 = vsub.f32 %v2749_v41, %v1157_v29  ;;  %1237 = vadd.xlane.f32.xlu0 %v1236_v30  ;;  %v1160_v33 = vpop.xlane.xlu0 %1159  ;;  %v1224_v40 = vsel %vm289_vm0, %v2791_v31, 0.0 }
 0x360   : > { %2228 = vpow2.f32 %v1216_v26  ;;  %v1186_v37 = vsub.f32 %v2751_v42, %v1160_v33 }
 0x361   : > { %v2794_v34 = vpop.eup %2218  ;;  %v1210_v36 = vmul.f32 1.442695, %v1185_v32 }
 0x362   : > { %v1163_v38 = vpop.xlane.xlu1 %1162  ;;  %v1245_v39 = vsel %vm289_vm0, %v2794_v34, 0.0  ;;  %v2801_v43 = vpop.eup %2220  ;;  %v1212_v49 = vmul.f32 1.442695, %v1186_v37 }
 0x363   : > { %2230 = vpow2.f32 %v1210_v36  ;;  %v1187_v41 = vsub.f32 %v2757_v45, %v1163_v38  ;;  %1246 = vadd.xlane.f32.xlu1 %v1245_v39  ;;  %1225 = vadd.xlane.f32.xlu0 %v1224_v40  ;;  %v1172_v46 = vpop.xlane.xlu0 %1171  ;;  %v1242_v53 = vsel %vm289_vm0, %v2801_v43, 0.0 }
 0x364   : > { %2232 = vpow2.f32 %v1208_v35  ;;  %v1190_v50 = vsub.f32 %v2755_v44, %v1172_v46 }
 0x365   : > { %v2804_v47 = vpop.eup %2222  ;;  %v1214_v42 = vmul.f32 1.442695, %v1187_v41 }
 0x366   : > { %v1175_v51 = vpop.xlane.xlu1 %1174  ;;  %v1233_v52 = vsel %vm289_vm0, %v2804_v47, 0.0  ;;  %v2811_v54 = vpop.eup %2224  ;;  %v1220_v56 = vmul.f32 1.442695, %v1190_v50 }
 0x367   : > { %2234 = vpow2.f32 %v1214_v42  ;;  %v1191_v45 = vsub.f32 %v2763_v48, %v1175_v51  ;;  %1234 = vadd.xlane.f32.xlu1 %v1233_v52  ;;  %1243 = vadd.xlane.f32.xlu0 %v1242_v53  ;;  %v1230_v58 = vsel %vm289_vm0, %v2811_v54, 0.0 }
 0x368   : > { %2236 = vpow2.f32 %v1212_v49 }
 0x369   : > { %v2814_v55 = vpop.eup %2226  ;;  %v1222_v57 = vmul.f32 1.442695, %v1191_v45 }
 0x36a   : > { %v1263_v44 = vsel %vm289_vm0, %v2814_v55, 0.0  ;;  %v2820_v59 = vpop.eup %2228 }
 0x36b   : > { %2238 = vpow2.f32 %v1222_v57  ;;  %1264 = vadd.xlane.f32.xlu1 %v1263_v44  ;;  %1231 = vadd.xlane.f32.xlu0 %v1230_v58  ;;  %v1260_v61 = vsel %vm289_vm0, %v2820_v59, 0.0 }
 0x36c   : > { %2240 = vpow2.f32 %v1220_v56 }
 0x36d   : > { %v2822_v60 = vpop.eup %2230 }
 0x36e   : > { %v1251_v48 = vsel %vm289_vm0, %v2822_v60, 0.0  ;;  %v2828_v62 = vpop.eup %2232 }
 0x36f   : > { %1252 = vadd.xlane.f32.xlu1 %v1251_v48  ;;  %1261 = vadd.xlane.f32.xlu0 %v1260_v61  ;;  %v1248_v5 = vsel %vm289_vm0, %v2828_v62, 0.0 }
 0x371   : > { %v2830_v63 = vpop.eup %2234 }
 0x372   : > { %v1257_v4 = vsel %vm289_vm0, %v2830_v63, 0.0  ;;  %v2836_v7 = vpop.eup %2236 }
 0x373   : > { %1258 = vadd.xlane.f32.xlu1 %v1257_v4  ;;  %1249 = vadd.xlane.f32.xlu0 %v1248_v5  ;;  %v1254_v11 = vsel %vm289_vm0, %v2836_v7, 0.0 }
 0x375   : > { %v2838_v8 = vpop.eup %2238 }
 0x376   : > { %v1269_v9 = vsel %vm289_vm0, %v2838_v8, 0.0  ;;  %v2844_v12 = vpop.eup %2240 }
 0x377   : > { %1270 = vadd.xlane.f32.xlu1 %v1269_v9  ;;  %1255 = vadd.xlane.f32.xlu0 %v1254_v11  ;;  %v1266_v6 = vsel %vm289_vm0, %v2844_v12, 0.0  ;;  %v1596_v11 = vld [vmem:[#allocation7] sm:$0xff] }
 0x37b   : > { %1267 = vadd.xlane.f32.xlu0 %v1266_v6  ;;  %v1597_v6 = vld [vmem:[#allocation7 + $0x8] sm:$0xff] }
 0x3e4   : > { %v1241_v15 = vpop.xlane.xlu1 %1240 }
 0x3e5   : > { %2242 = vrcp.f32 %v1241_v15 }
 0x3e8   : > { %v1229_v16 = vpop.xlane.xlu1 %1228 }
 0x3ec   : > { %v1238_v18 = vpop.xlane.xlu0 %1237 }
 0x3ed   : > { %2244 = vrcp.f32 %v1238_v18 }
 0x3ee   : > { %2246 = vrcp.f32 %v1229_v16 }
 0x3ef   : > { %v2243_v23 = vpop.eup %2242 }
 0x3f0   : > { %v1247_v19 = vpop.xlane.xlu1 %1246  ;;  %v1226_v20 = vpop.xlane.xlu0 %1225  ;;  %v1293_v29 = vmul.f32 %v2243_v23, %v2774_v10  ;;  %v2862_v10 = vld [vmem:[%s2962_s2 + $0x2] ss:$0 sm:$0xff] }
 0x3f1   : > { %2248 = vrcp.f32 %v1226_v20  ;;  %v578_v42 = vadd.f32 %v2708_v0, %v2862_v10  ;;  %v588_v23 = vadd.f32 %v2712_v2, %v2862_v10 }
 0x3f2   : > { %2250 = vrcp.f32 %v1247_v19 }
 0x3f3   : > { %v592_v57 = vmax.f32 %v578_v42, 0.0 }
 0x3f4   : > { %v1235_v21 = vpop.xlane.xlu1 %1234  ;;  %v1244_v22 = vpop.xlane.xlu0 %1243 }
 0x3f5   : > { %2252 = vrcp.f32 %v1244_v22 }
 0x3f6   : > { %2254 = vrcp.f32 %v1235_v21 }
 0x3f7   : > { %v2245_v24 = vpop.eup %2244 }
 0x3f8   : > { %v1265_v26 = vpop.xlane.xlu1 %1264  ;;  %v1232_v27 = vpop.xlane.xlu0 %1231  ;;  %v1292_v28 = vmul.f32 %v2245_v24, %v2786_v25 }
 0x3f9   : > { %v2247_v30 = vpop.eup %2246  ;;  %2256 = vrcp.f32 %v1232_v27 }
 0x3fa   : > { %v2111_v32 = vpack.c.bf16 %v1293_v29, %v1292_v28  ;;  %2258 = vrcp.f32 %v1265_v26  ;;  %v1289_v38 = vmul.f32 %v2247_v30, %v2780_v17 }
 0x3fb   : > { %v2249_v33 = vpop.eup %2248 }
 0x3fc   : > { %v1253_v35 = vpop.xlane.xlu1 %1252  ;;  %2112 = vmatpush3.bf16.msra.mxu0 %v2111_v32  ;;  %v1262_v36 = vpop.xlane.xlu0 %1261  ;;  %v1288_v37 = vmul.f32 %v2249_v33, %v2791_v31  ;;  %v1864_v33 = vld [vmem:[%s2964_s4] ss:$0 sm:$0xff] }
 0x3fd   : > { %2113 = vmatprep.subr.bf16.mxu0 %v2437_v13  ;;  %v2251_v39 = vpop.eup %2250  ;;  %2260 = vrcp.f32 %v1262_v36 }
 0x3fe   : > { %v2105_v25 = vpack.c.bf16 %v1289_v38, %v1288_v37  ;;  %2262 = vrcp.f32 %v1253_v35  ;;  %v1295_v31 = vmul.f32 %v2251_v39, %v2794_v34  ;;  %v573_v34 = vadd.f32 %v2862_v10, %v2710_v1 }
 0x3ff   : > { %v2253_v40 = vpop.eup %2252 }
 0x400   : > { %v1259_v41 = vpop.xlane.xlu1 %1258  ;;  %v1250_v46 = vpop.xlane.xlu0 %1249  ;;  %2106 = vmatpush3.bf16.msra.mxu1 %v2105_v25  ;;  %v1294_v49 = vmul.f32 %v2253_v40, %v2801_v43  ;;  %v591_v1 = vmax.f32 %v573_v34, 0.0 }
 0x401   : > { %v2255_v17 = vpop.eup %2254  ;;  %2264 = vrcp.f32 %v1250_v46  ;;  %2107 = vmatprep.subr.bf16.mxu1 %v2437_v13 }
 0x402   : > { %v2114_v50 = vpack.c.bf16 %v1295_v31, %v1294_v49  ;;  %2266 = vrcp.f32 %v1259_v41  ;;  %v1291_v56 = vmul.f32 %v2255_v17, %v2804_v47 }
 0x403   : > { %v2257_v51 = vpop.eup %2256 }
 0x404   : > { %v1271_v52 = vpop.xlane.xlu1 %1270  ;;  %v1256_v53 = vpop.xlane.xlu0 %1255  ;;  %2115 = vmatpush3.bf16.msra.mxu0 %v2114_v50  ;;  %v1290_v45 = vmul.f32 %v2257_v51, %v2811_v54 }
 0x405   : > { %v2259_v43 = vpop.eup %2258  ;;  %2268 = vrcp.f32 %v1256_v53  ;;  %2122 = vmatprep.subr.bf16.mxu0 %v2437_v13 }
 0x406   : > { %2270 = vrcp.f32 %v1271_v52  ;;  %v2108_v0 = vpack.c.bf16 %v1291_v56, %v1290_v45  ;;  %v1301_v47 = vmul.f32 %v2259_v43, %v2814_v55 }
 0x407   : > { %v2261_v44 = vpop.eup %2260  ;;  %2042 = vmatmul.mubr.msk.f32.vlgmr.msra.gmra.mrb[16].mxu0 %vm289_vm0, %v592_v57 }
 0x408   : > { %v1268_v58 = vpop.xlane.xlu0 %1267  ;;  %2109 = vmatpush3.bf16.msra.mxu1 %v2108_v0  ;;  %v1300_v54 = vmul.f32 %v2261_v44, %v2820_v59  ;;  %2063 = vmatprep.mubr.msk.f32.mxu0 %vm2438_vm2, %v2439_v14  ;;  %v2263_v48 = vpop.eup %2262 }
 0x409   : > { %2272 = vrcp.f32 %v1268_v58  ;;  %2116 = vmatprep.subr.bf16.mxu1 %v2437_v13  ;;  %v1297_v9 = vmul.f32 %v2263_v48, %v2822_v60  ;;  %v2128_v60 = vpack.c.bf16 %v1597_v6, %v1596_v11 }
 0x40a   : > { %v2123_v61 = vpack.c.bf16 %v1301_v47, %v1300_v54 }
 0x40b   : > { %v2265_v4 = vpop.eup %2264  ;;  %2031 = vmatmul.mubr.msk.f32.vlgmr.msra.gmra.mrb[12].mxu1 %vm289_vm0, %v591_v1 }
 0x40c   : > { %2124 = vmatpush3.bf16.msra.mxu0 %v2123_v61  ;;  %v1296_v5 = vmul.f32 %v2265_v4, %v2828_v62  ;;  %2052 = vmatprep.mubr.msk.f32.mxu1 %vm2438_vm2, %v2439_v14  ;;  %v2267_v55 = vpop.eup %2266  ;;  %v583_v62 = vadd.f32 %v2862_v10, %v2714_v3  ;;  %v594_v3 = vmax.f32 %v588_v23, 0.0 }
 0x40d   : > { %2125 = vmatprep.subr.bf16.mxu0 %v2437_v13  ;;  %v1299_v19 = vmul.f32 %v2267_v55, %v2830_v63  ;;  %v1598_v63 = vld [vmem:[#allocation7 + $0x10] sm:$0xff] }
 0x40e   : > { %v2117_v59 = vpack.c.bf16 %v1297_v9, %v1296_v5  ;;  %v593_v24 = vmax.f32 %v583_v62, 0.0 }
 0x40f   : > { %v2269_v15 = vpop.eup %2268 }
 0x410   : > { %v2271_v16 = vpop.eup %2270  ;;  %2118 = vmatpush3.bf16.msra.mxu1 %v2117_v59  ;;  %v1298_v18 = vmul.f32 %v2269_v15, %v2836_v7 }
 0x411   : > { %2119 = vmatprep.subr.bf16.mxu1 %v2437_v13  ;;  %v1303_v22 = vmul.f32 %v2271_v16, %v2838_v8  ;;  %v1599_v13 = vld [vmem:[#allocation7 + $0x18] sm:$0xff] }
 0x412   : > { %v2120_v20 = vpack.c.bf16 %v1299_v19, %v1298_v18  ;;  %v2132_v26 = vpack.c.bf16 %v1599_v13, %v1598_v63 }
 0x413   : > { %v2273_v14 = vpop.eup %2272 }
 0x414   : > { %v1302_v21 = vmul.f32 %v2273_v14, %v2844_v12  ;;  %2121 = vmatpush3.bf16.msra.mxu1 %v2120_v20 }
 0x415   : > { %2129 = vmatprep.subr.bf16.mxu1 %v2128_v60 }
 0x416   : > { %v2126_v7 = vpack.c.bf16 %v1303_v22, %v1302_v21 }
 0x417   : > { %2053 = vmatmul.mubr.msk.f32.vlgmr.msra.gmra.mrb[14].mxu1 %vm289_vm0, %v593_v24 }
 0x418   : > { %2127 = vmatpush3.bf16.msra.mxu0 %v2126_v7  ;;  %2131 = vmatpush3.bf16.msra.mxu1 %v2128_v60 }
 0x419   : > { %2133 = vmatprep.subr.bf16.mxu1 %v2132_v26 }
 0x41b   : > { %2064 = vmatmul.mubr.msk.f32.vlgmr.msra.gmra.mrb[18].mxu0 %vm289_vm0, %v594_v3 }
 0x41c   : > { %2135 = vmatpush3.bf16.msra.mxu1 %v2132_v26 }
 0x4da   : > { %v1446_v8 = vpop.f32.mrb[16].mxu0 }
 0x4db   : > { %v2043_v12 = vpop.f32.mrb[17].mxu0 }
 0x4de   : > { %v1373_v2 = vpop.f32.mrb[12].mxu1 }
 0x4df   : > { %v2032_v27 = vpop.f32.mrb[13].mxu1  ;;  %2074 = vmatprep.mubr.msk.f32.mxu1 %vm289_vm0, %v1373_v2 }
 0x4e0   : > { %2075 = vmatmul.mubr.msk.f32.vlgmr.msra.gmra.mrb[16].mxu1 %vm289_vm0, %v1446_v8 }
 0x4ea   : > { %v1519_v28 = vpop.f32.mrb[14].mxu1 }
 0x4eb   : > { %v2054_v29 = vpop.f32.mrb[15].mxu1  ;;  %2077 = vmatprep.mubr.msk.f32.mxu1 %vm289_vm0, %v1519_v28 }
 0x4ee   : > { %v1592_v30 = vpop.f32.mrb[18].mxu0 }
 0x4ef   : > { %v2065_v32 = vpop.f32.mrb[19].mxu0  ;;  %2078 = vmatmul.mubr.msk.f32.gmra.mrb[18].mxu1 %vm289_vm0, %v1592_v30 }
 0x5b3   : > { %v2076_v35 = vpop.f32.mrb[16].mxu1 }
 0x5b4   : > { %v1691_v36 = vadd.f32 %v2076_v35, %v1864_v33  ;;  %v1685_v37 = vpop.f32.mrb[17].mxu1 }
 0x5b5   : > { %v1686_v38 = vadd.f32 %v1864_v33, %v1685_v37 }
 0x5b6   : > { %1705 = vst.msk [vmem:[%s271_s30 + $0x8] sm:$0xff] %vm289_vm0, %v1691_v36 }
 0x5b7   : > { %1704 = vst.msk [vmem:[%s271_s30] sm:$0xff] %vm289_vm0, %v1686_v38 }
 0x5c2   : > { %v2079_v39 = vpop.f32.mrb[18].mxu1 }
 0x5c3   : > { %v1701_v10 = vadd.f32 %v2079_v39, %v1864_v33  ;;  %v1695_v25 = vpop.f32.mrb[19].mxu1 }
 0x5c4   : > { %v1696_v40 = vadd.f32 %v1864_v33, %v1695_v25 }
 0x5c5   : > { %1707 = vst.msk [vmem:[%s271_s30 + $0x18] sm:$0xff] %vm289_vm0, %v1701_v10 }
 0x5c6   : > { %1706 = vst.msk [vmem:[%s271_s30 + $0x10] sm:$0xff] %vm289_vm0, %v1696_v40 }
 0x5c7   : > { %2373 = shalt.err (!%p2370_p1)
}
 0x5c8   : > { %s2374_s16 = scalar_lea.hbm %s2914_s12, 512  ;;  %s2378_s13 = scalar_lea.hbm %s2965_s5, 1024 }
 0x5c9   : > { %p2375_p13 = scmp.ne.s32.totalorder %s2914_s12, %s2374_s16  ;;  %p2379_p4 = scmp.lt.u32.totalorder %s2914_s12, %s2965_s5 }
 0x5ca   : > { %p2380_p5 = scmp.lt.u32.totalorder %s2378_s13, %s2374_s16  ;;  %p2382_p11 = scmp.lt.u32.totalorder %s2374_s16, %s2914_s12 }
 0x5cb   : > { %p2376_p6 = pnand %p2375_p13, %p2979_p0 }
 0x5cc   : > { %p2381_p8 = por %p2380_p5, %p2379_p4 }
 0x5cd   : > { %p2377_p10 = pneg %p2376_p6 }
 0x5ce   : > { %p2383_p2 = por %p2382_p11, %p2381_p8 }
 0x5d0   : > { %p2384_p3 = pnand %p2383_p2, %p2377_p10 }
 0x5d2   : > { %2387 = shalt.err (!%p2384_p3)
}
 0x5d3   : > { %s2441_s17 = smov 128   ;;  %s2442_s7 = smov 8  }
 0x5d4   : > { %2146 = dma.vmem_to_hbm [thread:$0]  (%p2979_p0), %s2909_s11, 512, %s2914_s12, %s1709_s6, %s2441_s17, %s2441_s17, %s2442_s7  }
 0x5d5 PF: > { %s1737_s8 = sand.u32 1, %s2418_s18   ;;  %p2980_p7 = scmp.ne.s32.totalorder %s2970_s25, 0 }
 0x5d6   : > { %p2981_p9 = scmp.ge.s32.totalorder %s2430_s21, 2  ;;  %s1738_s22 = scalar_lea.sflag [#allocation4], %s1737_s8 }
 0x5d8   : > { %p2160_p12 = pnand %p2981_p9, %p2980_p7 }
 0x5da   : > { %2413 = dma.done.wait (!%p2160_p12), %s1738_s22, 512  }
 0x5db   : > { %2415 = vsyncadd (!%p2160_p12), %s1738_s22, 4294966784  ;;  %p19_p1 = scmp.ge.s32.totalorder %s2589_s29, 4   ;;  %s2982_s18 = smov %s2422_s19 }
 0x5dc   : > { %s2983_s19 = smov %s2426_s20  ;;  %s2984_s20 = smov %s2605_s27 }
 0x5dd   : > { %s2985_s21 = smov %s2589_s29  ;;  %21 = sbr.rel (!%p19_p1) target bundleno = 6 (0x6), region = 97 }
 0x5e4   :  { %1743 = vsyncpa [#allocation3], 1 }
 0x5e5   :  { %1745 = vsyncpa [#allocation3 + $0x1], 1 }
 0x5e6   :  { %1746 = vsyncpa [#allocation6], 1 }
 0x5e7   :  { %1747 = vsyncpa [#allocation4], 1 }
 0x5e8   :  { %1749 = vsyncpa [#allocation4 + $0x1], 1 }

</bundles_post_ra>
